<compile_context>
chip_gen: v5e
topology: v5e:2x2
jax: 0.10.0
libtpu: 0.0.40
codegen_flags: <defaults>
</compile_context>

<pallas_src>
import jax
import jax.numpy as jnp
import numpy as np
from jax.experimental import pallas as pl
from jax.experimental.pallas import tpu as pltpu

_LANE = 128
_SUBLANE = 8


def _round_up(x, m):
    return ((x + m - 1) // m) * m


# ---------------------------------------------------------------------------
# Pallas kernel: tiled broadcast-multiply-reduce
#   e_ref: (Bt, Nt, D) entity-stream tile
#   s_ref: (Bt, 1, D)  per-batch combined operand (resident across N sweep)
#   o_ref: (Bt, Nt)    scores
# ---------------------------------------------------------------------------
def _dot_score_kernel(e_ref, s_ref, o_ref):
    e = e_ref[...].astype(jnp.float32)
    s = s_ref[...].astype(jnp.float32)
    o_ref[...] = jnp.sum(e * s, axis=-1)


def complex_dot_score(e, s, *, vmem_budget_bytes=24 * 1024 * 1024):
    """score[b, n] = sum_d e[b, n, d] * s[b, d].

    e: (B, N, D) gathered entity embeddings (the big stream)
    s: (B, D)    small per-batch combined operand
    returns (B, N) float32 scores.
    """
    B, N, D = e.shape
    itemsize = jnp.dtype(e.dtype).itemsize

    if N == 1:
        # 'single' mode: tile over batch only.  Output is only B scalars so
        # lane density of the store is irrelevant; make the batch tile as
        # large as the VMEM budget allows to amortize per-step overhead.
        nt = 1
        Np = 1
        b8 = _round_up(B, _SUBLANE)
        bt = _SUBLANE
        for cand in (1024, 512, 256, 128, 64, 32, 16, 8):
            if b8 % cand == 0 and 2 * cand * D * itemsize <= vmem_budget_bytes:
                bt = cand
                break
        Bp = b8
    else:
        # negative-sample modes: lane-dense N tiles (multiples of 128).
        bt = _SUBLANE
        Np = _round_up(N, _LANE)
        nt = _LANE
        for cand in (1024, 512, 256, 128):
            if Np % cand == 0 and 2 * bt * cand * D * itemsize <= vmem_budget_bytes:
                nt = cand
                break
        Bp = _round_up(B, _SUBLANE)

    # Pad (no-op for production-friendly shapes: B % 8 == 0, N % 128 == 0).
    e_p = e
    if (Bp, Np) != (B, N):
        e_p = jnp.pad(e, ((0, Bp - B), (0, Np - N), (0, 0)))
    s_p = s if Bp == B else jnp.pad(s, ((0, Bp - B), (0, 0)))
    s_p = s_p.reshape(Bp, 1, D).astype(jnp.float32)

    grid = (Bp // bt, Np // nt)  # N innermost -> s block resident per batch tile

    out = pl.pallas_call(
        _dot_score_kernel,
        out_shape=jax.ShapeDtypeStruct((Bp, Np), jnp.float32),
        grid=grid,
        in_specs=[
            pl.BlockSpec((bt, nt, D), lambda bi, ni: (bi, ni, 0)),
            pl.BlockSpec((bt, 1, D), lambda bi, ni: (bi, 0, 0)),
        ],
        out_specs=pl.BlockSpec((bt, nt), lambda bi, ni: (bi, ni)),
        compiler_params=pltpu.CompilerParams(
            dimension_semantics=("parallel", "parallel"),
            vmem_limit_bytes=48 * 1024 * 1024,
        ),
    )(e_p, s_p)

    return out[:B, :N]


# ---------------------------------------------------------------------------
# Wrapper-side ComplEx folds (tiny O(B*D) work on the small operands).
# ---------------------------------------------------------------------------
def _combine_head_relation(h, r):
    """s = [re_h*re_r - im_h*im_r, re_h*im_r + im_h*re_r]  ('single'/'tail-batch')."""
    hd = h.shape[-1] // 2
    re_h, im_h = h[..., :hd], h[..., hd:]
    re_r, im_r = r[..., :hd], r[..., hd:]
    re_s = re_h * re_r - im_h * im_r
    im_s = re_h * im_r + im_h * re_r
    return jnp.concatenate([re_s, im_s], axis=-1)


def _combine_relation_tail(r, t):
    """s = [re_r*re_t + im_r*im_t, re_r*im_t - im_r*re_t]  ('head-batch')."""
    hd = r.shape[-1] // 2
    re_r, im_r = r[..., :hd], r[..., hd:]
    re_t, im_t = t[..., :hd], t[..., hd:]
    re_s = re_r * re_t + im_r * im_t
    im_s = re_r * im_t - im_r * re_t
    return jnp.concatenate([re_s, im_s], axis=-1)


# ---------------------------------------------------------------------------
# KGEModel (ComplEx) in JAX
# ---------------------------------------------------------------------------
class KGEModelJax:
    def __init__(self, nentity, nrelation, hidden_dim, gamma, key,
                 param_dtype=jnp.float32):
        # param_dtype=jnp.bfloat16 halves HBM traffic (kernel accumulates in
        # f32 either way); default f32 matches the PyTorch module.
        assert hidden_dim % 2 == 0, "ComplEx's hidden dim should be divided by 2"
        self.nentity = nentity
        self.nrelation = nrelation
        self.hidden_dim = hidden_dim
        self.epsilon = 2.0
        self.gamma = float(gamma)
        self.embedding_range = (self.gamma + self.epsilon) / hidden_dim
        k1, k2 = jax.random.split(key)
        self.entity_embedding = jax.random.uniform(
            k1, (nentity, hidden_dim), dtype=jnp.float32,
            minval=-self.embedding_range, maxval=self.embedding_range,
        ).astype(param_dtype)
        self.relation_embedding = jax.random.uniform(
            k2, (nrelation, hidden_dim), dtype=jnp.float32,
            minval=-self.embedding_range, maxval=self.embedding_range,
        ).astype(param_dtype)

    def forward(self, sample, mode='single'):
        ent = self.entity_embedding
        rel = self.relation_embedding
        if mode == 'single':
            h = jnp.take(ent, sample[:, 0], axis=0)
            r = jnp.take(rel, sample[:, 1], axis=0)
            t = jnp.take(ent, sample[:, 2], axis=0)
            s = _combine_head_relation(h, r)
            return complex_dot_score(t[:, None, :], s)          # (B, 1)
        elif mode == 'head-batch':
            tail_part, head_part = sample
            B, N = head_part.shape
            head = jnp.take(ent, head_part.reshape(-1), axis=0).reshape(B, N, -1)
            r = jnp.take(rel, tail_part[:, 1], axis=0)
            t = jnp.take(ent, tail_part[:, 2], axis=0)
            s = _combine_relation_tail(r, t)
            return complex_dot_score(head, s)                    # (B, N)
        elif mode == 'tail-batch':
            head_part, tail_part = sample
            B, N = tail_part.shape
            h = jnp.take(ent, head_part[:, 0], axis=0)
            r = jnp.take(rel, head_part[:, 1], axis=0)
            tail = jnp.take(ent, tail_part.reshape(-1), axis=0).reshape(B, N, -1)
            s = _combine_head_relation(h, r)
            return complex_dot_score(tail, s)                    # (B, N)
        else:
            raise ValueError('mode %s not supported' % mode)


# ---------------------------------------------------------------------------
# Pure-JAX reference (mirrors the PyTorch ComplEx exactly) for verification.
# ---------------------------------------------------------------------------
def _complex_ref(head, relation, tail, head_batch):
    hd = head.shape[-1] // 2
    re_h, im_h = head[..., :hd], head[..., hd:]
    re_r, im_r = relation[..., :hd], relation[..., hd:]
    re_t, im_t = tail[..., :hd], tail[..., hd:]
    if head_batch:
        re_s = re_r * re_t + im_r * im_t
        im_s = re_r * im_t - im_r * re_t
        score = re_h * re_s + im_h * im_s
    else:
        re_s = re_h * re_r - im_h * im_r
        im_s = re_h * im_r + im_h * re_r
        score = re_s * re_t + im_s * im_t
    return jnp.sum(score, axis=-1)


if __name__ == "__main__":
    nentity, nrelation, hidden_dim, gamma = 64, 16, 32, 12.0
    batch, neg = 8, 16

    key = jax.random.PRNGKey(0)
    kparam, ks1, ks2, ks3, ks4 = jax.random.split(key, 5)
    model = KGEModelJax(nentity, nrelation, hidden_dim, gamma, kparam)

    # positive triples (batch, 3)
    sample = jnp.stack([
        jax.random.randint(ks1, (batch,), 0, nentity),
        jax.random.randint(ks2, (batch,), 0, nrelation),
        jax.random.randint(ks3, (batch,), 0, nentity),
    ], axis=1).astype(jnp.int32)

    # negative candidates (batch, neg)
    neg_tails = jax.random.randint(ks4, (batch, neg), 0, nentity).astype(jnp.int32)
    neg_heads = jax.random.randint(jax.random.fold_in(ks4, 1),
                                   (batch, neg), 0, nentity).astype(jnp.int32)

    # run all three forward modes through the Pallas kernel
    score_single = jax.block_until_ready(model.forward(sample, mode='single'))
    score_tb = jax.block_until_ready(
        model.forward((sample, neg_tails), mode='tail-batch'))
    score_hb = jax.block_until_ready(
        model.forward((sample, neg_heads), mode='head-batch'))

    # references
    h = jnp.take(model.entity_embedding, sample[:, 0], axis=0)[:, None, :]
    r = jnp.take(model.relation_embedding, sample[:, 1], axis=0)[:, None, :]
    t = jnp.take(model.entity_embedding, sample[:, 2], axis=0)[:, None, :]
    ref_single = _complex_ref(h, r, t, head_batch=False)

    t_neg = jnp.take(model.entity_embedding, neg_tails.reshape(-1), axis=0
                     ).reshape(batch, neg, -1)
    ref_tb = _complex_ref(h, r, t_neg, head_batch=False)

    h_neg = jnp.take(model.entity_embedding, neg_heads.reshape(-1), axis=0
                     ).reshape(batch, neg, -1)
    ref_hb = _complex_ref(h_neg, r, t, head_batch=True)

    assert score_single.shape == (batch, 1)
    assert score_tb.shape == (batch, neg)
    assert score_hb.shape == (batch, neg)
    np.testing.assert_allclose(np.asarray(score_single), np.asarray(ref_single),
                               rtol=1e-5, atol=1e-5)
    np.testing.assert_allclose(np.asarray(score_tb), np.asarray(ref_tb),
                               rtol=1e-5, atol=1e-5)
    np.testing.assert_allclose(np.asarray(score_hb), np.asarray(ref_hb),
                               rtol=1e-5, atol=1e-5)

    print("KERNEL_OK")
</pallas_src>

<mosaic_0001>
module attributes {stable_mosaic.version = 11 : i64} {
  func.func @_dot_score_kernel(%arg0: i32, %arg1: i32, %arg2: memref<8x1x32xf32, #tpu.memory_space<vmem>>, %arg3: memref<8x1x32xf32, #tpu.memory_space<vmem>>, %arg4: memref<8x1xf32, #tpu.memory_space<vmem>>) attributes {dimension_semantics = [#tpu.dimension_semantics<parallel>, #tpu.dimension_semantics<parallel>], iteration_bounds = array<i64: 1, 1>, scalar_prefetch = 0 : i64, scratch_operands = 0 : i64, tpu.core_type = #tpu.core_type<tc>, window_params = [{transform_indices = @transform_0, window_bounds = array<i64: 8, 1, 32>}, {transform_indices = @transform_1, window_bounds = array<i64: 8, 1, 32>}, {transform_indices = @transform_2, window_bounds = array<i64: 8, 1>}]} {
    %c0 = arith.constant 0 : index
    %c0_0 = arith.constant 0 : index
    %c0_1 = arith.constant 0 : index
    %0 = vector.load %arg2[%c0, %c0_0, %c0_1] : memref<8x1x32xf32, #tpu.memory_space<vmem>>, vector<8x1x32xf32>
    %c0_2 = arith.constant 0 : index
    %c0_3 = arith.constant 0 : index
    %c0_4 = arith.constant 0 : index
    %1 = vector.load %arg3[%c0_2, %c0_3, %c0_4] : memref<8x1x32xf32, #tpu.memory_space<vmem>>, vector<8x1x32xf32>
    %2 = arith.mulf %0, %1 : vector<8x1x32xf32>
    %cst = arith.constant dense<0.000000e+00> : vector<8x1xf32>
    %3 = vector.multi_reduction <add>, %2, %cst [2] : vector<8x1x32xf32> to vector<8x1xf32>
    %c0_5 = arith.constant 0 : index
    %c0_6 = arith.constant 0 : index
    %4 = vector.load %arg4[%c0_5, %c0_6] : memref<8x1xf32, #tpu.memory_space<vmem>>, vector<8x1xf32>
    tpu.vector_store %arg4[%c0_5, %c0_6], %3 {strides = array<i32>} : memref<8x1xf32, #tpu.memory_space<vmem>>, vector<8x1xf32>,
    return
  }
  func.func @transform_0(%arg0: i32, %arg1: i32) -> (i32, i32, i32) {
    %c0_i32 = arith.constant 0 : i32
    %c0_i32_0 = arith.constant 0 : i32
    return %arg0, %arg1, %c0_i32 : i32, i32, i32
  }
  func.func @transform_1(%arg0: i32, %arg1: i32) -> (i32, i32, i32) {
    %c0_i32 = arith.constant 0 : i32
    %c0_i32_0 = arith.constant 0 : i32
    %c0_i32_1 = arith.constant 0 : i32
    return %arg0, %c0_i32, %c0_i32_0 : i32, i32, i32
  }
  func.func @transform_2(%arg0: i32, %arg1: i32) -> (i32, i32) {
    %c0_i32 = arith.constant 0 : i32
    return %arg0, %arg1 : i32, i32
  }
}

</mosaic_0001>

<bundles_post_ra>
// kernel: tpu_custom_call.1
= control target key start
LH: loop header
LB: loop body
LE: loop exit
PB: predicated region body
PF: predicated region fallthrough
CT: control target
= control target key end

     0   :  { %7 = vsyncpa [#allocation3], 0  ;;  %s222_s0 = inlined_call_operand.hbm [shape: f32[8,1,32], index: 0, kind: input, shape index: {}]   ;;  %s223_s1 = inlined_call_operand.hbm [shape: f32[8,1,32], index: 1, kind: input, shape index: {}]   ;;  %s224_s2 = inlined_call_operand.vmem [shape: f32[8,1], index: 2, kind: output, shape index: {}]  }
   0x1   :  { %s13_s11 = sshll.u32 %s222_s0, 4  ;;  %s14_s11 = int_to_ptr.hbm [resolvable:$true] %s13_s11 }
   0x2   :  { %8 = vsyncpa [#allocation5], 0  ;;  %s186_s12 = smov [#allocation2]   ;;  %s26_s16 = sshll.u32 %s223_s1, 4  ;;  %s27_s16 = int_to_ptr.hbm [resolvable:$true] %s26_s16 }
   0x3   :  { %s15_s13 = sshll.u32 %s186_s12, 4  ;;  %s187_s17 = smov 16   ;;  %s16_s13 = int_to_ptr.vmem [resolvable:$true] %s15_s13 }
   0x4   :  { %s188_s18 = smov 1   ;;  %s189_s19 = smov [#allocation4]  }
   0x5   :  { %21 = dma.hbm_to_vmem [thread:$0]  %s14_s11, 128, %s16_s13, [#allocation3], %s187_s17, %s187_s17, %s188_s18  }
   0x6   :  { %s28_s20 = sshll.u32 %s189_s19, 4  ;;  %s29_s20 = int_to_ptr.vmem [resolvable:$true] %s28_s20 }
   0x7   :  { %34 = dma.hbm_to_vmem [thread:$0]  %s27_s16, 128, %s29_s20, [#allocation5], %s187_s17, %s187_s17, %s188_s18  }
   0x8   :  { %182 = dma.done.wait [#allocation3], 128  }
   0x9   :  { %183 = vsyncadd [#allocation3], 4294967168 }
   0xa   :  { %184 = dma.done.wait [#allocation5], 128  }
   0xb   :  { %185 = vsyncadd [#allocation5], 4294967168  ;;  %vm67_vm0 = vcmask 253952   ;;  %v44_v0 = vld [vmem:[#allocation2 + $0x1] sm:$0x1]  ;;  %vm101_vm1 = vcmask 1041409  }
   0xc   :  { %v52_v1 = vld [vmem:[#allocation4 + $0x1] sm:$0x1]  ;;  %v43_v2 = vld [vmem:[#allocation2] sm:$0x1]  ;;  %v51_v4 = vld [vmem:[#allocation4] sm:$0x1] }
   0xd   :  { %v60_v3 = vmul.f32 %v52_v1, %v44_v0  ;;  %v47_v5 = vld [vmem:[#allocation2 + $0x4] sm:$0x1]  ;;  %v55_v6 = vld [vmem:[#allocation4 + $0x4] sm:$0x1]  ;;  %v59_v7 = vmul.f32 %v51_v4, %v43_v2  ;;  %v45_v9 = vld [vmem:[#allocation2 + $0x2] sm:$0x1] }
   0xe   :  { %v63_v8 = vmul.f32 %v55_v6, %v47_v5  ;;  %v53_v10 = vld [vmem:[#allocation4 + $0x2] sm:$0x1]  ;;  %v46_v11 = vld [vmem:[#allocation2 + $0x3] sm:$0x1]  ;;  %v54_v13 = vld [vmem:[#allocation4 + $0x3] sm:$0x1] }
   0xf   :  { %v71_v12 = vsel %vm67_vm0, %v60_v3, 0.0  ;;  %v48_v14 = vld [vmem:[#allocation2 + $0x5] sm:$0x1]  ;;  %v68_v15 = vsel %vm67_vm0, %v59_v7, 0.0  ;;  %v56_v17 = vld [vmem:[#allocation4 + $0x5] sm:$0x1]  ;;  %v61_v18 = vmul.f32 %v53_v10, %v45_v9  ;;  %v62_v19 = vmul.f32 %v54_v13, %v46_v11 }
  0x10   :  { %72 = vadd.xlane.f32.xlu0 %v71_v12  ;;  %v80_v16 = vsel %vm67_vm0, %v63_v8, 0.0  ;;  %69 = vadd.xlane.f32.xlu1 %v68_v15  ;;  %v64_v20 = vmul.f32 %v56_v17, %v48_v14  ;;  %v49_v24 = vld [vmem:[#allocation2 + $0x6] sm:$0x1]  ;;  %v57_v25 = vld [vmem:[#allocation4 + $0x6] sm:$0x1]  ;;  %vm104_vm2 = vcmask 1042434  }
  0x11   :  { %81 = vadd.xlane.f32.xlu2 %v80_v16  ;;  %v74_v21 = vsel %vm67_vm0, %v61_v18, 0.0  ;;  %v77_v22 = vsel %vm67_vm0, %v62_v19, 0.0  ;;  %v50_v26 = vld [vmem:[#allocation2 + $0x7] sm:$0x1]  ;;  %v58_v27 = vld [vmem:[#allocation4 + $0x7] sm:$0x1]  ;;  %v65_v28 = vmul.f32 %v57_v25, %v49_v24 }
  0x12   :  { %v83_v23 = vsel %vm67_vm0, %v64_v20, 0.0  ;;  %v66_v29 = vmul.f32 %v58_v27, %v50_v26  ;;  %vm107_vm3 = vcmask 1043459   ;;  %vm110_vm4 = vcmask 1044484  }
  0x13   :  { %v86_v30 = vsel %vm67_vm0, %v65_v28, 0.0  ;;  %vm113_vm5 = vcmask 1045509   ;;  %vm116_vm6 = vcmask 1046534   ;;  %vm119_vm7 = vcmask 1047559  }
  0x14   :  { %v89_v31 = vsel %vm67_vm0, %v66_v29, 0.0  ;;  %vm122_vm8 = vcmask 7168  }
  0x18   :  { %75 = vadd.xlane.f32.xlu0 %v74_v21  ;;  %78 = vadd.xlane.f32.xlu1 %v77_v22 }
  0x19   :  { %84 = vadd.xlane.f32.xlu2 %v83_v23 }
  0x20   :  { %87 = vadd.xlane.f32.xlu0 %v86_v30  ;;  %90 = vadd.xlane.f32.xlu1 %v89_v31 }
  0x83   :  { %v73_v32 = vpop.xlane.xlu0 %72  ;;  %v70_v33 = vpop.xlane.xlu1 %69 }
  0x84   :  { %v82_v34 = vpop.xlane.xlu2 %81  ;;  %v100_v35 = vrot.slane %v73_v32, 7 }
  0x85   :  { %v109_v44 = vrot.slane %v82_v34, 4 }
  0x86   :  { %v102_v39 = vsel %vm101_vm1, %v100_v35, %v70_v33 }
  0x8b   :  { %v76_v36 = vpop.xlane.xlu0 %75  ;;  %v79_v38 = vpop.xlane.xlu1 %78 }
  0x8c   :  { %v103_v37 = vrot.slane %v76_v36, 6  ;;  %v106_v40 = vrot.slane %v79_v38, 5  ;;  %v85_v42 = vpop.xlane.xlu2 %84 }
  0x8d   :  { %v112_v45 = vrot.slane %v85_v42, 3 }
  0x8e   :  { %v105_v41 = vsel %vm104_vm2, %v103_v37, %v102_v39 }
  0x8f   :  { %v108_v43 = vsel %vm107_vm3, %v106_v40, %v105_v41 }
  0x90   :  { %v111_v46 = vsel %vm110_vm4, %v109_v44, %v108_v43 }
  0x91   :  { %v114_v50 = vsel %vm113_vm5, %v112_v45, %v111_v46 }
  0x93   :  { %v88_v47 = vpop.xlane.xlu0 %87  ;;  %v91_v49 = vpop.xlane.xlu1 %90 }
  0x94   :  { %v115_v48 = vrot.slane %v88_v47, 2  ;;  %v118_v51 = vrot.slane %v91_v49, 1 }
  0x96   :  { %v117_v52 = vsel %vm116_vm6, %v115_v48, %v114_v50 }
  0x97   :  { %v120_v53 = vsel %vm119_vm7, %v118_v51, %v117_v52 }
  0x98   :  { %123 = vst.msk [vmem:[%s224_s2] sm:$0xff] %vm122_vm8, %v120_v53 }
  0x99   :  { %128 = vsyncpa [#allocation3], 1 }
  0x9a   :  { %129 = vsyncpa [#allocation5], 1 }

</bundles_post_ra>
